<compile_context>
chip_gen: v5e
topology: v5e:2x2
jax: 0.10.0
libtpu: 0.0.40
codegen_flags: <defaults>
</compile_context>

<pallas_src>
import jax
import jax.numpy as jnp
from jax.experimental import pallas as pl
from jax.experimental.pallas import tpu as pltpu


def se_kernel(x_ref, w1_ref, w2_ref, o_ref):
    # x_ref: (B, C, HW)  w1_ref: (C, Cr)  w2_ref: (Cr, C)  o_ref: (B, C, HW)
    xf = x_ref[...].astype(jnp.float32)

    # Global average pool over the spatial (lane) axis -> (B, C).
    pooled = jnp.mean(xf, axis=-1)

    # fc: Linear(C -> C/r, no bias) -> ReLU -> Linear(C/r -> C, no bias) -> Sigmoid
    # Batched over B: one MXU pass per matmul instead of per-sample M=1 matmuls.
    h = jnp.dot(pooled, w1_ref[...].astype(jnp.float32),
                preferred_element_type=jnp.float32)
    h = jnp.maximum(h, 0.0)
    s = jnp.dot(h, w2_ref[...].astype(jnp.float32),
                preferred_element_type=jnp.float32)

    # sigmoid(s) = 1 / (1 + exp(-s)); exp + approximate reciprocal both on EUP.
    gate = pl.reciprocal(1.0 + jnp.exp(-s), approx=True)          # (B, C)

    # Scale each channel of x by its gate; cast only on the final store.
    o_ref[...] = (xf * gate[:, :, None]).astype(o_ref.dtype)


def se_layer(x, w1, w2):
    """x: [B, C, H, W]; w1: [C, C//r] (= W1.T); w2: [C//r, C] (= W2.T)."""
    B, C, H, W = x.shape
    HW = H * W
    x3 = x.reshape(B, C, HW)

    out3 = pl.pallas_call(
        se_kernel,
        out_shape=jax.ShapeDtypeStruct((B, C, HW), x.dtype),
        # Single block holding the whole (B, C, HW) slab: removes the per-step
        # (~0.35 us) grid overhead and keeps HW=256 lane-dense (unmasked vst).
        # (C, HW) = (32, 256) is (8,128)-aligned; weight blocks are full-array.
        in_specs=[
            pl.BlockSpec((B, C, HW), lambda: (0, 0, 0)),
            pl.BlockSpec(w1.shape, lambda: (0, 0)),
            pl.BlockSpec(w2.shape, lambda: (0, 0)),
        ],
        out_specs=pl.BlockSpec((B, C, HW), lambda: (0, 0, 0)),
        # Output block comes from exactly the same (fully read) x block, so
        # aliasing the HBM buffers is safe and drops a separate output alloc.
        input_output_aliases={0: 0},
        compiler_params=pltpu.CompilerParams(
            vmem_limit_bytes=32 * 1024 * 1024),
    )(x3, w1, w2)
    # TODO(synk): for realistic SE shapes where C*HW no longer fits VMEM,
    # restructure to a two-phase grid (pool-accumulate over HW tiles, then
    # re-stream x and apply the gate) per the scaling note in the review.
    return out3.reshape(B, C, H, W)


def se_layer_ref(x, w1, w2):
    pooled = jnp.mean(x.astype(jnp.float32), axis=(2, 3))        # [B, C]
    h = jnp.maximum(pooled @ w1.astype(jnp.float32), 0.0)        # [B, C//r]
    s = jax.nn.sigmoid(h @ w2.astype(jnp.float32))               # [B, C]
    return (x.astype(jnp.float32) * s[:, :, None, None]).astype(x.dtype)


if __name__ == "__main__":
    B, C, H, W = 2, 32, 16, 16
    reduction = 16
    Cr = C // reduction  # 2

    key = jax.random.PRNGKey(0)
    kx, k1, k2 = jax.random.split(key, 3)
    x = jax.random.normal(kx, (B, C, H, W), dtype=jnp.float32)
    # Deterministic weight init (transposed PyTorch Linear weights, no bias).
    w1 = jax.random.normal(k1, (C, Cr), dtype=jnp.float32) * 0.1   # Linear(C -> C/r).T
    w2 = jax.random.normal(k2, (Cr, C), dtype=jnp.float32) * 0.1   # Linear(C/r -> C).T

    # Compute the pure-JAX reference before the (buffer-aliasing) kernel call.
    ref = se_layer_ref(x, w1, w2)
    ref = jax.block_until_ready(ref)

    out = se_layer(x, w1, w2)
    out = jax.block_until_ready(out)

    assert out.shape == (B, C, H, W)
    # Slightly relaxed tolerance: approx EUP reciprocal in the sigmoid gate.
    assert jnp.allclose(out, ref, atol=5e-3, rtol=5e-3), "mismatch vs reference"
    print("KERNEL_OK")
</pallas_src>

<mosaic_0001>
module attributes {stable_mosaic.version = 11 : i64} {
  func.func @se_kernel(%arg0: memref<2x32x256xf32, #tpu.memory_space<vmem>>, %arg1: memref<32x2xf32, #tpu.memory_space<vmem>>, %arg2: memref<2x32xf32, #tpu.memory_space<vmem>>, %arg3: memref<2x32x256xf32, #tpu.memory_space<vmem>>) attributes {dimension_semantics = [], scalar_prefetch = 0 : i64, scratch_operands = 0 : i64, tpu.core_type = #tpu.core_type<tc>} {
    %c0 = arith.constant 0 : index
    %c0_0 = arith.constant 0 : index
    %c0_1 = arith.constant 0 : index
    %0 = vector.load %arg0[%c0, %c0_0, %c0_1] : memref<2x32x256xf32, #tpu.memory_space<vmem>>, vector<2x32x256xf32>
    %cst = arith.constant dense<0.000000e+00> : vector<2x32xf32>
    %1 = vector.multi_reduction <add>, %0, %cst [2] : vector<2x32x256xf32> to vector<2x32xf32>
    %cst_2 = arith.constant 2.560000e+02 : f32
    %2 = vector.broadcast %cst_2 : f32 to vector<2x32xf32>
    %3 = arith.divf %1, %2 : vector<2x32xf32>
    %c0_3 = arith.constant 0 : index
    %c0_4 = arith.constant 0 : index
    %4 = vector.load %arg1[%c0_3, %c0_4] : memref<32x2xf32, #tpu.memory_space<vmem>>, vector<32x2xf32>
    %cst_5 = arith.constant dense<0.000000e+00> : vector<2x2xf32>
    %5 = tpu.matmul %3, %4, %cst_5 {dimension_numbers = #tpu.dot_dimension_numbers<[1], [0], [0], [1], [0, 0, 1, 1], [], []>} : vector<2x32xf32>, vector<32x2xf32>, vector<2x2xf32> -> vector<2x2xf32>
    %cst_6 = arith.constant 0.000000e+00 : f32
    %6 = vector.broadcast %cst_6 : f32 to vector<2x2xf32>
    %7 = arith.maximumf %5, %6 : vector<2x2xf32>
    %c0_7 = arith.constant 0 : index
    %c0_8 = arith.constant 0 : index
    %8 = vector.load %arg2[%c0_7, %c0_8] : memref<2x32xf32, #tpu.memory_space<vmem>>, vector<2x32xf32>
    %cst_9 = arith.constant dense<0.000000e+00> : vector<2x32xf32>
    %9 = tpu.matmul %7, %8, %cst_9 {dimension_numbers = #tpu.dot_dimension_numbers<[1], [0], [0], [1], [0, 0, 1, 1], [], []>} : vector<2x2xf32>, vector<2x32xf32>, vector<2x32xf32> -> vector<2x32xf32>
    %cst_10 = arith.constant 0.000000e+00 : f32
    %10 = vector.broadcast %cst_10 : f32 to vector<2x32xf32>
    %11 = arith.subf %10, %9 : vector<2x32xf32>
    %12 = math.exp %11 : vector<2x32xf32>
    %cst_11 = arith.constant 1.000000e+00 : f32
    %13 = vector.broadcast %cst_11 : f32 to vector<2x32xf32>
    %14 = arith.addf %13, %12 : vector<2x32xf32>
    %15 = tpu.reciprocal %14 {approx = true} : vector<2x32xf32> -> vector<2x32xf32>
    %16 = vector.shape_cast %15 : vector<2x32xf32> to vector<2x32x1xf32>
    %17 = vector.broadcast %16 : vector<2x32x1xf32> to vector<2x32x256xf32>
    %18 = arith.mulf %0, %17 : vector<2x32x256xf32>
    %c0_12 = arith.constant 0 : index
    %c0_13 = arith.constant 0 : index
    %c0_14 = arith.constant 0 : index
    %19 = vector.load %arg3[%c0_12, %c0_13, %c0_14] : memref<2x32x256xf32, #tpu.memory_space<vmem>>, vector<2x32x256xf32>
    tpu.vector_store %arg3[%c0_12, %c0_13, %c0_14], %18 {strides = array<i32>} : memref<2x32x256xf32, #tpu.memory_space<vmem>>, vector<2x32x256xf32>,
    return
  }
}

</mosaic_0001>

<bundles_post_ra>
// kernel: tpu_custom_call.1
= control target key start
LH: loop header
LB: loop body
LE: loop exit
PB: predicated region body
PF: predicated region fallthrough
CT: control target
= control target key end

     0   :  { %8 = vsyncpa [#allocation3], 0  ;;  %s472_s0 = inlined_call_operand.hbm [shape: f32[2,32,256], index: 0, kind: input, shape index: {}, may-alias: {0,3}]   ;;  %s473_s1 = inlined_call_operand.vmem [shape: f32[32,2], index: 1, kind: input, shape index: {}]   ;;  %s474_s2 = inlined_call_operand.vmem [shape: f32[2,32], index: 2, kind: input, shape index: {}]   ;;  %s475_s3 = inlined_call_operand.hbm [shape: f32[2,32,256], index: 3, kind: output, shape index: {}, may-alias: {0,3}]  }
   0x1   :  { %9 = vsyncpa [#allocation4], 0  ;;  %s14_s14 = sshll.u32 %s472_s0, 4  ;;  %s356_s15 = smov [#allocation2]   ;;  %s15_s14 = int_to_ptr.hbm [resolvable:$true] %s14_s14 }
   0x2   :  { %s16_s16 = sshll.u32 %s356_s15, 4  ;;  %s357_s17 = smov 256   ;;  %s17_s16 = int_to_ptr.vmem [resolvable:$true] %s16_s16 }
   0x3   :  { %s358_s18 = smov 16  }
   0x4   :  { %22 = dma.hbm_to_vmem [thread:$0]  %s15_s14, 2048, %s17_s16, [#allocation3], %s357_s17, %s357_s17, %s358_s18  }
   0x5   :  { %352 = dma.done.wait [#allocation3], 2048  }
   0x6   :  { %353 = vsyncadd [#allocation3], 4294965248  ;;  %v387_v0 = vld [vmem:[#allocation2 + $0x40] sm:$0xff]  ;;  %v389_v1 = vld [vmem:[#allocation2 + $0x48] sm:$0xff]  ;;  %v359_v25 = vmov 256.0   ;;  %v98_v36 = vlaneseq  ;;  %vm103_vm1 = vcmask 130112  }
   0x7   :  { %v391_v2 = vld [vmem:[#allocation2] sm:$0xff]  ;;  %v59_v3 = vadd.f32 %v389_v1, %v387_v0  ;;  %v395_v4 = vld [vmem:[#allocation2 + $0x8] sm:$0xff]  ;;  %v405_v9 = vld [vmem:[#allocation2 + $0x50] sm:$0xff]  ;;  %298 = vrcp.f32 %v359_v25  ;;  %vm107_vm2 = vcmask 195712   ;;  %vm111_vm3 = vcmask 261312   ;;  %s268_s30 = sshll.u32 %s475_s3, 4  ;;  %s269_s30 = int_to_ptr.hbm [resolvable:$true] %s268_s30 }
   0x8   :  { %v397_v5 = vld [vmem:[#allocation2 + $0x20] sm:$0xff]  ;;  %v399_v6 = vld [vmem:[#allocation2 + $0x28] sm:$0xff]  ;;  %v47_v7 = vadd.f32 %v395_v4, %v391_v2  ;;  %v407_v10 = vld [vmem:[#allocation2 + $0x58] sm:$0xff]  ;;  %v99_v38 = vand.u32 127, %v98_v36  ;;  %vm120_vm4 = vcmask 1041409   ;;  %vm122_vm5 = vcmask 261120  }
   0x9   :  { %v53_v8 = vadd.f32 %v399_v6, %v397_v5  ;;  %60 = vadd.xlane.f32.xlu1 %v59_v3  ;;  %v409_v11 = vld [vmem:[#allocation2 + $0x10] sm:$0xff]  ;;  %v411_v12 = vld [vmem:[#allocation2 + $0x18] sm:$0xff]  ;;  %v413_v13 = vld [vmem:[#allocation2 + $0x60] sm:$0xff]  ;;  %v62_v15 = vadd.f32 %v407_v10, %v405_v9  ;;  %vm151_vm6 = vcmask 1041408   ;;  %vm147_vm7 = vcmask 15360  }
   0xa   :  { %48 = vadd.xlane.f32.xlu0 %v47_v7  ;;  %v415_v14 = vld [vmem:[#allocation2 + $0x68] sm:$0xff]  ;;  %v50_v16 = vadd.f32 %v411_v12, %v409_v11  ;;  %v423_v18 = vld [vmem:[#allocation2 + $0x70] sm:$0xff]  ;;  %v425_v19 = vld [vmem:[#allocation2 + $0x78] sm:$0xff]  ;;  %v101_v41 = vadd.s32 4294967288, %v99_v38  ;;  %v105_v50 = vadd.s32 4294967280, %v99_v38  ;;  %v109_v54 = vadd.s32 4294967272, %v99_v38 }
   0xb   :  { %54 = vadd.xlane.f32.xlu2 %v53_v8  ;;  %v65_v17 = vadd.f32 %v415_v14, %v413_v13  ;;  %v427_v20 = vld [vmem:[#allocation2 + $0x30] sm:$0xff]  ;;  %v429_v21 = vld [vmem:[#allocation2 + $0x38] sm:$0xff]  ;;  %v68_v22 = vadd.f32 %v425_v19, %v423_v18  ;;  %v87_v27 = vld [vmem:[%s473_s1 + $0x8] sm:$0xff] }
   0xc   :  { %v56_v23 = vadd.f32 %v429_v21, %v427_v20  ;;  %v89_v24 = vld [vmem:[%s473_s1 + $0x18] sm:$0xff]  ;;  %v88_v26 = vld [vmem:[%s473_s1 + $0x10] sm:$0xff]  ;;  %v86_v28 = vld [vmem:[%s473_s1] sm:$0xff] }
   0xd   :  { %137 = vmatpush.msra.mxu0 %v89_v24  ;;  %v299_v29 = vpop.eup %298 }
   0xe   :  { %v72_v30 = vmul.f32 256.0, %v299_v29  ;;  %vm76_vm0 = vweird.f32 %v299_v29 }
   0xf   :  { %138 = vmatpush.msra.mxu0 %v88_v26  ;;  %v182_v26 = vshrl.u32 %v98_v36, 7 }
  0x10   :  { %v73_v31 = vsub.f32 1.0, %v72_v30 }
  0x11   :  { %63 = vadd.xlane.f32.xlu1 %v62_v15  ;;  %139 = vmatpush.msra.mxu0 %v87_v27  ;;  %v195_v27 = vadd.s32 16, %v182_v26 }
  0x12   :  { %51 = vadd.xlane.f32.xlu0 %v50_v16  ;;  %v74_v32 = vmul.f32 %v299_v29, %v73_v31  ;;  %289 = vset.pattern.permute.xlu2 %v182_v26 }
  0x13   :  { %66 = vadd.xlane.f32.xlu2 %v65_v17  ;;  %140 = vmatpush.msra.mxu0 %v86_v28  ;;  %v189_v28 = vadd.s32 8, %v182_v26 }
  0x14   :  { %v75_v37 = vadd.f32 %v299_v29, %v74_v32  ;;  %291 = vset.pattern.permute.xlu1 %v195_v27 }
  0x15   :  { %290 = vset.pattern.permute.xlu0 %v189_v28 }
  0x16   :  { %v77_v39 = vsel %vm76_vm0, %v299_v29, %v75_v37  ;;  %v201_v37 = vadd.s32 24, %v182_v26 }
  0x19   :  { %69 = vadd.xlane.f32.xlu1 %v68_v22 }
  0x1a   :  { %57 = vadd.xlane.f32.xlu0 %v56_v23  ;;  %v146_v23 = vld [vmem:[%s474_s2] sm:$0x3]  ;;  %s360_s2 = smov [#allocation5]  }
  0x1b   :  { %282 = vmatpush.msk.msra.mxu1 %vm151_vm6, %v146_v23  ;;  %s266_s27 = sshll.u32 %s360_s2, 4  ;;  %s267_s27 = int_to_ptr.vmem [resolvable:$true] %s266_s27 }
  0x7c   :  { %v61_v33 = vpop.xlane.xlu1 %60 }
  0x7d   :  { %v49_v34 = vpop.xlane.xlu0 %48  ;;  %v82_v46 = vmul.f32 %v77_v39, %v61_v33 }
  0x7e   :  { %v55_v35 = vpop.xlane.xlu2 %54  ;;  %v78_v47 = vmul.f32 %v77_v39, %v49_v34 }
  0x7f   :  { %v113_v52 = vperm.slane %v82_v46, %v99_v38  ;;  %v80_v53 = vmul.f32 %v77_v39, %v55_v35 }
  0x80   :  { %v100_v55 = vperm.slane %v78_v47, %v99_v38 }
  0x81   :  { %v106_v63 = vperm.slane %v80_v53, %v105_v50 }
  0x84   :  { %v64_v40 = vpop.xlane.xlu1 %63 }
  0x85   :  { %v83_v42 = vmul.f32 %v77_v39, %v64_v40  ;;  %v52_v43 = vpop.xlane.xlu0 %51 }
  0x86   :  { %v67_v44 = vpop.xlane.xlu2 %66  ;;  %v79_v45 = vmul.f32 %v77_v39, %v52_v43 }
  0x87   :  { %v84_v48 = vmul.f32 %v77_v39, %v67_v44  ;;  %v114_v49 = vperm.slane %v83_v42, %v101_v41 }
  0x88   :  { %v102_v51 = vperm.slane %v79_v45, %v101_v41 }
  0x89   :  { %v116_v56 = vperm.slane %v84_v48, %v105_v50  ;;  %v115_v58 = vsel %vm103_vm1, %v114_v49, %v113_v52 }
  0x8a   :  { %v104_v61 = vsel %vm103_vm1, %v102_v51, %v100_v55 }
  0x8b   :  { %v117_v8 = vsel %vm107_vm2, %v116_v56, %v115_v58  ;;  %v108_v15 = vsel %vm107_vm2, %v106_v63, %v104_v61 }
  0x8c   :  { %v70_v57 = vpop.xlane.xlu1 %69 }
  0x8d   :  { %v85_v59 = vmul.f32 %v77_v39, %v70_v57  ;;  %v58_v60 = vpop.xlane.xlu0 %57 }
  0x8e   :  { %v81_v62 = vmul.f32 %v77_v39, %v58_v60 }
  0x8f   :  { %v118_v3 = vperm.slane %v85_v59, %v109_v54 }
  0x90   :  { %v110_v7 = vperm.slane %v81_v62, %v109_v54 }
  0x91   :  { %v119_v16 = vsel %vm111_vm3, %v118_v3, %v117_v8 }
  0x92   :  { %v112_v17 = vsel %vm111_vm3, %v110_v7, %v108_v15 }
  0x93   :  { %v121_v22 = vsel %vm120_vm4, %v119_v16, %v112_v17 }
  0x94   :  { %281 = vmatmul.msk.f32.vlgmr.msra.gmra.mxu0 %vm122_vm5, %v121_v22 }
 0x111   :  { %v142_v24 = vpop.f32.mrf.mxu0 }
 0x112   :  { %v145_v25 = vmax.f32 %v142_v24, 0.0 }
 0x114   :  { %283 = vmatmul.msk.f32.vlgmr.msra.gmra.mxu1 %vm147_vm7, %v145_v25 }
 0x191   :  { %v172_v29 = vpop.f32.mrf.mxu1 }
 0x192   :  { %v175_v30 = vsub.f32 0.0, %v172_v29 }
 0x194   :  { %v176_v31 = vmul.f32 1.442695, %v175_v30 }
 0x196   :  { %300 = vpow2.f32 %v176_v31 }
 0x19c   :  { %v301_v32 = vpop.eup %300 }
 0x19d   :  { %v178_v33 = vadd.f32 1.0, %v301_v32 }
 0x19f   :  { %302 = vrcp.f32 %v178_v33 }
 0x1a5   :  { %v303_v34 = vpop.eup %302 }
 0x1a6   :  { %v180_v35 = vperm.slane %v303_v34, 0  ;;  %v205_v36 = vperm.slane %v303_v34, 1 }
 0x1a8   :  { %197 = vperm.xlu1 %291, %v180_v35   ;;  %191 = vperm.xlu0 %290, %v180_v35  }
 0x1a9   :  { %185 = vperm.xlu2 %289, %v180_v35  }
 0x1b0   :  { %294 = vset.pattern.permute.xlu1 %v189_v28  ;;  %297 = vset.pattern.permute.xlu0 %v201_v37 }
 0x1b1   :  { %292 = vset.pattern.permute.xlu2 %v201_v37 }
 0x1b8   :  { %216 = vperm.xlu1 %294, %v205_v36  }
 0x1b9   :  { %203 = vperm.xlu2 %292, %v180_v35  }
 0x1c0   :  { %296 = vset.pattern.permute.xlu1 %v201_v37 }
 0x1c1   :  { %293 = vset.pattern.permute.xlu2 %v182_v26 }
 0x1c8   :  { %228 = vperm.xlu1 %296, %v205_v36  }
 0x1c9   :  { %210 = vperm.xlu2 %293, %v205_v36  }
 0x1d1   :  { %295 = vset.pattern.permute.xlu2 %v195_v27 }
 0x1d9   :  { %222 = vperm.xlu2 %295, %v205_v36  }
 0x203   :  { %v186_v38 = vpop.permute.xlu2 %185 }
 0x204   :  { %v230_v39 = vmul.f32 %v186_v38, %v391_v2  ;;  %v231_v40 = vmul.f32 %v186_v38, %v395_v4 }
 0x206   :  { %246 = vst [vmem:[#allocation5] sm:$0xff] %v230_v39 }
 0x207   :  { %247 = vst [vmem:[#allocation5 + $0x8] sm:$0xff] %v231_v40 }
 0x213   :  { %v204_v41 = vpop.permute.xlu2 %203 }
 0x214   :  { %v236_v42 = vmul.f32 %v204_v41, %v427_v20  ;;  %v237_v43 = vmul.f32 %v204_v41, %v429_v21 }
 0x216   :  { %252 = vst [vmem:[#allocation5 + $0x30] sm:$0xff] %v236_v42 }
 0x217   :  { %253 = vst [vmem:[#allocation5 + $0x38] sm:$0xff] %v237_v43 }
 0x21a   :  { %v198_v44 = vpop.permute.xlu1 %197  ;;  %v192_v45 = vpop.permute.xlu0 %191 }
 0x21b   :  { %v234_v46 = vmul.f32 %v198_v44, %v397_v5  ;;  %v235_v47 = vmul.f32 %v198_v44, %v399_v6  ;;  %v232_v48 = vmul.f32 %v192_v45, %v409_v11  ;;  %v233_v2 = vmul.f32 %v192_v45, %v411_v12 }
 0x21d   :  { %250 = vst [vmem:[#allocation5 + $0x20] sm:$0xff] %v234_v46 }
 0x21e   :  { %251 = vst [vmem:[#allocation5 + $0x28] sm:$0xff] %v235_v47 }
 0x21f   :  { %248 = vst [vmem:[#allocation5 + $0x10] sm:$0xff] %v232_v48 }
 0x220   :  { %249 = vst [vmem:[#allocation5 + $0x18] sm:$0xff] %v233_v2 }
 0x223   :  { %v211_v4 = vpop.permute.xlu2 %210 }
 0x224   :  { %v238_v20 = vmul.f32 %v211_v4, %v387_v0  ;;  %v239_v21 = vmul.f32 %v211_v4, %v389_v1 }
 0x226   :  { %254 = vst [vmem:[#allocation5 + $0x40] sm:$0xff] %v238_v20 }
 0x227   :  { %255 = vst [vmem:[#allocation5 + $0x48] sm:$0xff] %v239_v21 }
 0x22a   :  { %v217_v49 = vpop.permute.xlu1 %216 }
 0x22b   :  { %v240_v5 = vmul.f32 %v217_v49, %v405_v9  ;;  %v241_v6 = vmul.f32 %v217_v49, %v407_v10 }
 0x22d   :  { %256 = vst [vmem:[#allocation5 + $0x50] sm:$0xff] %v240_v5 }
 0x22e   :  { %257 = vst [vmem:[#allocation5 + $0x58] sm:$0xff] %v241_v6 }
 0x233   :  { %v223_v11 = vpop.permute.xlu2 %222 }
 0x234   :  { %v242_v12 = vmul.f32 %v223_v11, %v413_v13  ;;  %v243_v50 = vmul.f32 %v223_v11, %v415_v14 }
 0x236   :  { %258 = vst [vmem:[#allocation5 + $0x60] sm:$0xff] %v242_v12 }
 0x237   :  { %259 = vst [vmem:[#allocation5 + $0x68] sm:$0xff] %v243_v50 }
 0x23a   :  { %v229_v0 = vpop.permute.xlu1 %228 }
 0x23b   :  { %v244_v1 = vmul.f32 %v229_v0, %v423_v18  ;;  %v245_v9 = vmul.f32 %v229_v0, %v425_v19 }
 0x23d   :  { %260 = vst [vmem:[#allocation5 + $0x70] sm:$0xff] %v244_v1 }
 0x23e   :  { %261 = vst [vmem:[#allocation5 + $0x78] sm:$0xff] %v245_v9 }
 0x23f   :  { %274 = dma.vmem_to_hbm [thread:$0]  %s267_s27, 2048, %s269_s30, [#allocation4], %s357_s17, %s357_s17, %s358_s18  }
 0x240   :  { %354 = dma.done.wait [#allocation4], 2048  }
 0x241   :  { %355 = vsyncadd [#allocation4], 4294965248 }
 0x242   :  { %279 = vsyncpa [#allocation3], 1 }
 0x243   :  { %280 = vsyncpa [#allocation4], 1 }

</bundles_post_ra>
